<compile_context>
chip_gen: v5e
topology: v5e:2x2
jax: 0.10.0
libtpu: 0.0.40
codegen_flags: <defaults>
</compile_context>

<pallas_src>
import functools
import math

import jax
import jax.numpy as jnp
from jax.experimental import pallas as pl
from jax.experimental.pallas import tpu as pltpu

LN_EPS = 1e-12  # config.layer_norm_eps default


# ----------------------------- kernel body ----------------------------------

def _m3bert_output_kernel(h_ref, x_ref, w_ref, b_ref, g_ref, beta_ref,
                          o_ref, acc_ref):
    bf16, f32 = jnp.bfloat16, jnp.float32
    k = pl.program_id(1)
    nk = pl.num_programs(1)

    @pl.when(k == 0)
    def _():
        acc_ref[...] = jnp.zeros_like(acc_ref)

    # dense partial product for this K-slice (bf16 operands, f32 accumulation)
    acc_ref[...] += jnp.dot(h_ref[...].astype(bf16), w_ref[...],
                            preferred_element_type=f32)

    @pl.when(k == nk - 1)
    def _():
        # bias + residual + LayerNorm, all in f32
        # TODO(synk): dropout is identity (eval mode).
        y = acc_ref[...] + b_ref[...] + x_ref[...]
        mu = jnp.mean(y, axis=-1, keepdims=True)
        var = jnp.mean((y - mu) ** 2, axis=-1, keepdims=True)
        out = (y - mu) * jax.lax.rsqrt(var + LN_EPS) * g_ref[...] + beta_ref[...]
        o_ref[...] = out.astype(o_ref.dtype)


# ----------------------------- wrapper ---------------------------------------

def _pick_tile(dim, max_tile, align):
    """Largest divisor of `dim` that is <= max_tile and a multiple of `align`;
    falls back to the full dim (full-extent blocks are always legal)."""
    if dim <= max_tile:
        return dim
    for t in range(max_tile, align - 1, -align):
        if dim % t == 0:
            return t
    return dim


def m3bert_output_pallas(hidden_states, input_tensor, params,
                         *, m_tile=None, k_tile=None):
    """hidden_states: [B, S, I] f32/bf16, input_tensor: [B, S, H] f32."""
    B, S, I = hidden_states.shape
    H = input_tensor.shape[-1]
    M = B * S

    h2 = hidden_states.reshape(M, I)
    x2 = input_tensor.reshape(M, I) if I == H else input_tensor.reshape(M, H)

    TM = m_tile if m_tile is not None else _pick_tile(M, 256, 8)
    TK = k_tile if k_tile is not None else _pick_tile(I, 1024, 128)
    n_m, n_k = M // TM, I // TK

    w = params["w"].astype(jnp.bfloat16)          # (I, H)
    b = params["b"].reshape(1, H)                  # (1, H) f32
    g = params["gamma"].reshape(1, H)              # (1, H) f32
    beta = params["beta"].reshape(1, H)            # (1, H) f32

    out2 = pl.pallas_call(
        _m3bert_output_kernel,
        out_shape=jax.ShapeDtypeStruct((M, H), input_tensor.dtype),
        grid=(n_m, n_k),
        in_specs=[
            pl.BlockSpec((TM, TK), lambda i, k: (i, k)),   # hidden_states tile
            pl.BlockSpec((TM, H), lambda i, k: (i, 0)),    # residual tile
            pl.BlockSpec((TK, H), lambda i, k: (k, 0)),    # weight K-slice
            pl.BlockSpec((1, H), lambda i, k: (0, 0)),     # bias
            pl.BlockSpec((1, H), lambda i, k: (0, 0)),     # LN gamma
            pl.BlockSpec((1, H), lambda i, k: (0, 0)),     # LN beta
        ],
        out_specs=pl.BlockSpec((TM, H), lambda i, k: (i, 0)),
        scratch_shapes=[pltpu.VMEM((TM, H), jnp.float32)],  # dense accumulator
        compiler_params=pltpu.CompilerParams(
            dimension_semantics=("parallel", "arbitrary"),
            vmem_limit_bytes=64 * 1024 * 1024),
    )(h2, x2, w, b, g, beta)

    return out2.reshape(B, S, H)


# ----------------------------- pure-JAX reference ----------------------------
# Mirrors the kernel's precision policy (bf16 matmul operands, f32 accumulate)
# so the comparison isolates kernel bugs rather than dtype policy.

def _m3bert_output_ref(hidden_states, input_tensor, params):
    bf16, f32 = jnp.bfloat16, jnp.float32
    y = jnp.dot(hidden_states.astype(bf16), params["w"].astype(bf16),
                preferred_element_type=f32) + params["b"]
    y = y + input_tensor
    mu = jnp.mean(y, -1, keepdims=True)
    var = jnp.mean((y - mu) ** 2, -1, keepdims=True)
    return (y - mu) / jnp.sqrt(var + LN_EPS) * params["gamma"] + params["beta"]


# ----------------------------- main -------------------------------------------

if __name__ == "__main__":
    # NOTE: toy shapes for the smoke test; in production I and H are multiples
    # of 128 so stores are lane-dense and the K reduction axis actually tiles.
    B, S, I, H = 2, 8, 64, 32

    root = jax.random.PRNGKey(0)
    k_h, k_x, k_w = jax.random.split(root, 3)

    hidden_states = jax.random.normal(k_h, (B, S, I), jnp.float32)
    input_tensor = jax.random.normal(k_x, (B, S, H), jnp.float32)

    params = {
        "w": (jax.random.normal(k_w, (I, H), jnp.float32) * 0.02),  # (in, out)
        "b": jnp.zeros((H,), jnp.float32),
        "gamma": jnp.ones((H,), jnp.float32),
        "beta": jnp.zeros((H,), jnp.float32),
    }

    out = m3bert_output_pallas(hidden_states, input_tensor, params)
    out = jax.block_until_ready(out)

    ref = _m3bert_output_ref(hidden_states, input_tensor, params)
    err = float(jnp.max(jnp.abs(out - ref)))
    assert err < 5e-3, f"mismatch vs reference: {err}"

    print("KERNEL_OK")
</pallas_src>

<mosaic_0001>
module attributes {stable_mosaic.version = 11 : i64} {
  func.func @_m3bert_output_kernel(%arg0: i32, %arg1: i32, %arg2: memref<16x64xf32, #tpu.memory_space<vmem>>, %arg3: memref<16x32xf32, #tpu.memory_space<vmem>>, %arg4: memref<64x32xbf16, #tpu.memory_space<vmem>>, %arg5: memref<1x32xf32, #tpu.memory_space<vmem>>, %arg6: memref<1x32xf32, #tpu.memory_space<vmem>>, %arg7: memref<1x32xf32, #tpu.memory_space<vmem>>, %arg8: memref<16x32xf32, #tpu.memory_space<vmem>>, %arg9: memref<16x32xf32, #tpu.memory_space<vmem>>) attributes {dimension_semantics = [#tpu.dimension_semantics<parallel>, #tpu.dimension_semantics<arbitrary>], iteration_bounds = array<i64: 1, 1>, scalar_prefetch = 0 : i64, scratch_operands = 1 : i64, tpu.core_type = #tpu.core_type<tc>, window_params = [{transform_indices = @transform_0, window_bounds = array<i64: 16, 64>}, {transform_indices = @transform_1, window_bounds = array<i64: 16, 32>}, {transform_indices = @transform_2, window_bounds = array<i64: 64, 32>}, {pipeline_mode = #tpu.pipeline_mode<synchronous>, transform_indices = @transform_3, window_bounds = array<i64: 1, 32>}, {pipeline_mode = #tpu.pipeline_mode<synchronous>, transform_indices = @transform_4, window_bounds = array<i64: 1, 32>}, {pipeline_mode = #tpu.pipeline_mode<synchronous>, transform_indices = @transform_5, window_bounds = array<i64: 1, 32>}, {transform_indices = @transform_6, window_bounds = array<i64: 16, 32>}]} {
    %c0_i32 = arith.constant 0 : i32
    %0 = arith.cmpi eq, %arg1, %c0_i32 : i32
    %1 = arith.extui %0 : i1 to i32
    %c0_i32_0 = arith.constant 0 : i32
    %2 = arith.cmpi ne, %1, %c0_i32_0 : i32
    scf.if %2 {
      %cst_10 = arith.constant 0.000000e+00 : f32
      %13 = vector.broadcast %cst_10 : f32 to vector<16x32xf32>
      %c0_11 = arith.constant 0 : index
      %c0_12 = arith.constant 0 : index
      %14 = vector.load %arg9[%c0_11, %c0_12] : memref<16x32xf32, #tpu.memory_space<vmem>>, vector<16x32xf32>
      tpu.vector_store %arg9[%c0_11, %c0_12], %13 {strides = array<i32>} : memref<16x32xf32, #tpu.memory_space<vmem>>, vector<16x32xf32>,
    } else {
    }
    %c0 = arith.constant 0 : index
    %c0_1 = arith.constant 0 : index
    %3 = vector.load %arg9[%c0, %c0_1] : memref<16x32xf32, #tpu.memory_space<vmem>>, vector<16x32xf32>
    %c0_2 = arith.constant 0 : index
    %c0_3 = arith.constant 0 : index
    %4 = vector.load %arg2[%c0_2, %c0_3] : memref<16x64xf32, #tpu.memory_space<vmem>>, vector<16x64xf32>
    %5 = arith.truncf %4 : vector<16x64xf32> to vector<16x64xbf16>
    %c0_4 = arith.constant 0 : index
    %c0_5 = arith.constant 0 : index
    %6 = vector.load %arg4[%c0_4, %c0_5] : memref<64x32xbf16, #tpu.memory_space<vmem>>, vector<64x32xbf16>
    %cst = arith.constant dense<0.000000e+00> : vector<16x32xf32>
    %7 = tpu.matmul %5, %6, %cst {dimension_numbers = #tpu.dot_dimension_numbers<[1], [0], [0], [1], [0, 0, 1, 1], [], []>} : vector<16x64xbf16>, vector<64x32xbf16>, vector<16x32xf32> -> vector<16x32xf32>
    %8 = arith.addf %3, %7 : vector<16x32xf32>
    %c0_6 = arith.constant 0 : index
    %c0_7 = arith.constant 0 : index
    %9 = vector.load %arg9[%c0_6, %c0_7] : memref<16x32xf32, #tpu.memory_space<vmem>>, vector<16x32xf32>
    tpu.vector_store %arg9[%c0_6, %c0_7], %8 {strides = array<i32>} : memref<16x32xf32, #tpu.memory_space<vmem>>, vector<16x32xf32>,
    %c0_i32_8 = arith.constant 0 : i32
    %10 = arith.cmpi eq, %arg1, %c0_i32_8 : i32
    %11 = arith.extui %10 : i1 to i32
    %c0_i32_9 = arith.constant 0 : i32
    %12 = arith.cmpi ne, %11, %c0_i32_9 : i32
    scf.if %12 {
      %c0_10 = arith.constant 0 : index
      %c0_11 = arith.constant 0 : index
      %13 = vector.load %arg9[%c0_10, %c0_11] : memref<16x32xf32, #tpu.memory_space<vmem>>, vector<16x32xf32>
      %c0_12 = arith.constant 0 : index
      %c0_13 = arith.constant 0 : index
      %14 = vector.load %arg5[%c0_12, %c0_13] : memref<1x32xf32, #tpu.memory_space<vmem>>, vector<1x32xf32>
      %15 = vector.broadcast %14 : vector<1x32xf32> to vector<16x32xf32>
      %16 = arith.addf %13, %15 : vector<16x32xf32>
      %c0_14 = arith.constant 0 : index
      %c0_15 = arith.constant 0 : index
      %17 = vector.load %arg3[%c0_14, %c0_15] : memref<16x32xf32, #tpu.memory_space<vmem>>, vector<16x32xf32>
      %18 = arith.addf %16, %17 : vector<16x32xf32>
      %cst_16 = arith.constant dense<0.000000e+00> : vector<16xf32>
      %19 = vector.multi_reduction <add>, %18, %cst_16 [1] : vector<16x32xf32> to vector<16xf32>
      %20 = vector.shape_cast %19 : vector<16xf32> to vector<16x1xf32>
      %cst_17 = arith.constant 3.200000e+01 : f32
      %21 = vector.broadcast %cst_17 : f32 to vector<16x1xf32>
      %22 = arith.divf %20, %21 : vector<16x1xf32>
      %23 = vector.broadcast %22 : vector<16x1xf32> to vector<16x32xf32>
      %24 = arith.subf %18, %23 : vector<16x32xf32>
      %25 = arith.mulf %24, %24 : vector<16x32xf32>
      %cst_18 = arith.constant dense<0.000000e+00> : vector<16xf32>
      %26 = vector.multi_reduction <add>, %25, %cst_18 [1] : vector<16x32xf32> to vector<16xf32>
      %27 = vector.shape_cast %26 : vector<16xf32> to vector<16x1xf32>
      %cst_19 = arith.constant 3.200000e+01 : f32
      %28 = vector.broadcast %cst_19 : f32 to vector<16x1xf32>
      %29 = arith.divf %27, %28 : vector<16x1xf32>
      %30 = vector.broadcast %22 : vector<16x1xf32> to vector<16x32xf32>
      %31 = arith.subf %18, %30 : vector<16x32xf32>
      %cst_20 = arith.constant 9.99999996E-13 : f32
      %32 = vector.broadcast %cst_20 : f32 to vector<16x1xf32>
      %33 = arith.addf %29, %32 : vector<16x1xf32>
      %34 = math.rsqrt %33 : vector<16x1xf32>
      %35 = vector.broadcast %34 : vector<16x1xf32> to vector<16x32xf32>
      %36 = arith.mulf %31, %35 : vector<16x32xf32>
      %c0_21 = arith.constant 0 : index
      %c0_22 = arith.constant 0 : index
      %37 = vector.load %arg6[%c0_21, %c0_22] : memref<1x32xf32, #tpu.memory_space<vmem>>, vector<1x32xf32>
      %38 = vector.broadcast %37 : vector<1x32xf32> to vector<16x32xf32>
      %39 = arith.mulf %36, %38 : vector<16x32xf32>
      %c0_23 = arith.constant 0 : index
      %c0_24 = arith.constant 0 : index
      %40 = vector.load %arg7[%c0_23, %c0_24] : memref<1x32xf32, #tpu.memory_space<vmem>>, vector<1x32xf32>
      %41 = vector.broadcast %40 : vector<1x32xf32> to vector<16x32xf32>
      %42 = arith.addf %39, %41 : vector<16x32xf32>
      %c0_25 = arith.constant 0 : index
      %c0_26 = arith.constant 0 : index
      %43 = vector.load %arg8[%c0_25, %c0_26] : memref<16x32xf32, #tpu.memory_space<vmem>>, vector<16x32xf32>
      tpu.vector_store %arg8[%c0_25, %c0_26], %42 {strides = array<i32>} : memref<16x32xf32, #tpu.memory_space<vmem>>, vector<16x32xf32>,
    } else {
    }
    return
  }
  func.func @transform_0(%arg0: i32, %arg1: i32) -> (i32, i32) {
    %c0_i32 = arith.constant 0 : i32
    return %arg0, %arg1 : i32, i32
  }
  func.func @transform_1(%arg0: i32, %arg1: i32) -> (i32, i32) {
    %c0_i32 = arith.constant 0 : i32
    %c0_i32_0 = arith.constant 0 : i32
    return %arg0, %c0_i32 : i32, i32
  }
  func.func @transform_2(%arg0: i32, %arg1: i32) -> (i32, i32) {
    %c0_i32 = arith.constant 0 : i32
    %c0_i32_0 = arith.constant 0 : i32
    return %arg1, %c0_i32 : i32, i32
  }
  func.func @transform_3(%arg0: i32, %arg1: i32) -> (i32, i32) {
    %c0_i32 = arith.constant 0 : i32
    %c0_i32_0 = arith.constant 0 : i32
    %c0_i32_1 = arith.constant 0 : i32
    return %c0_i32, %c0_i32_0 : i32, i32
  }
  func.func @transform_4(%arg0: i32, %arg1: i32) -> (i32, i32) {
    %c0_i32 = arith.constant 0 : i32
    %c0_i32_0 = arith.constant 0 : i32
    %c0_i32_1 = arith.constant 0 : i32
    return %c0_i32, %c0_i32_0 : i32, i32
  }
  func.func @transform_5(%arg0: i32, %arg1: i32) -> (i32, i32) {
    %c0_i32 = arith.constant 0 : i32
    %c0_i32_0 = arith.constant 0 : i32
    %c0_i32_1 = arith.constant 0 : i32
    return %c0_i32, %c0_i32_0 : i32, i32
  }
  func.func @transform_6(%arg0: i32, %arg1: i32) -> (i32, i32) {
    %c0_i32 = arith.constant 0 : i32
    %c0_i32_0 = arith.constant 0 : i32
    return %arg0, %c0_i32 : i32, i32
  }
}

</mosaic_0001>

<bundles_post_ra>
// kernel: tpu_custom_call.1
= control target key start
LH: loop header
LB: loop body
LE: loop exit
PB: predicated region body
PF: predicated region fallthrough
CT: control target
= control target key end

     0   :  { %vm29_vm0 = vcmask 261120   ;;  %v251_v1 = vmov 0.0   ;;  %s337_s0 = inlined_call_operand.vmem [shape: f32[16,64], index: 0, kind: input, shape index: {}]   ;;  %s338_s1 = inlined_call_operand.vmem [shape: f32[16,32], index: 1, kind: input, shape index: {}]   ;;  %s339_s2 = inlined_call_operand.vmem [shape: bf16[64,32], index: 2, kind: input, shape index: {}]   ;;  %s340_s3 = inlined_call_operand.vmem [shape: f32[1,32], index: 3, kind: input, shape index: {}]   ;;  %s341_s4 = inlined_call_operand.vmem [shape: f32[1,32], index: 4, kind: input, shape index: {}]   ;;  %s342_s5 = inlined_call_operand.vmem [shape: f32[1,32], index: 5, kind: input, shape index: {}]   ;;  %s343_s6 = inlined_call_operand.hbm [shape: f32[16,32], index: 6, kind: output, shape index: {}]  }
   0x1   :  { %v210_v0 = vld [vmem:[%s339_s2 + $0x18] sm:$0xff]  ;;  %30 = vst.msk [vmem:[#allocation2] sm:$0xff] %vm29_vm0, %v251_v1  ;;  %v209_v2 = vld [vmem:[%s339_s2 + $0x10] sm:$0xff] }
   0x2   :  { %77 = vmatpush.bf16.msra.mxu0 %v210_v0  ;;  %31 = vst.msk [vmem:[#allocation2 + $0x8] sm:$0xff] %vm29_vm0, %v251_v1 }
   0x3   :  { %11 = vsyncpa [#allocation4], 0  ;;  %v208_v3 = vld [vmem:[%s339_s2 + $0x8] sm:$0xff]  ;;  %v207_v4 = vld [vmem:[%s339_s2] sm:$0xff]  ;;  %vm69_vm1 = vcmask 523264   ;;  %v252_v25 = vmov 32.0  }
   0x4   :  { %v34_v5 = vld [vmem:[%s337_s0] sm:$0xff]  ;;  %v35_v6 = vld [vmem:[%s337_s0 + $0x8] sm:$0xff]  ;;  %219 = vrcp.f32 %v252_v25  ;;  %s178_s18 = sshll.u32 %s343_s6, 4  ;;  %s255_s19 = smov 8   ;;  %s179_s18 = int_to_ptr.hbm [resolvable:$true] %s178_s18 }
   0x5   :  { %v36_v7 = vpack.c.bf16 %v35_v6, %v34_v5  ;;  %v216_v12 = vld [vmem:[%s340_s3] ss:$0 sm:$0xff]  ;;  %v104_v21 = vld [vmem:[%s338_s1 + $0x8] sm:$0xff] }
   0x6   :  { %78 = vmatpush.bf16.msra.mxu0 %v209_v2  ;;  %v103_v16 = vld [vmem:[%s338_s1] sm:$0xff] }
   0x7   :  { %v217_v56 = vld [vmem:[%s341_s4] ss:$0 sm:$0xff]  ;;  %s253_s4 = smov [#allocation3]  }
   0x8   :  { %v32_v8 = vld [vmem:[#allocation2] sm:$0xff]  ;;  %s176_s15 = sshll.u32 %s253_s4, 4  ;;  %s177_s15 = int_to_ptr.vmem [resolvable:$true] %s176_s15 }
   0x9   :  { %v33_v11 = vld [vmem:[#allocation2 + $0x8] sm:$0xff]  ;;  %v218_v60 = vld [vmem:[%s342_s5] ss:$0 sm:$0xff]  ;;  %s254_s5 = smov 128  }
   0xa   :  { %79 = vmatpush.bf16.msra.mxu0 %v208_v3  ;;  %v220_v26 = vpop.eup %219 }
   0xb   :  { %v114_v27 = vmul.f32 32.0, %v220_v26  ;;  %vm118_vm2 = vweird.f32 %v220_v26 }
   0xd   :  { %v115_v28 = vsub.f32 1.0, %v114_v27 }
   0xe   :  { %80 = vmatpush.bf16.msra.mxu0 %v207_v4 }
   0xf   :  { %v116_v29 = vmul.f32 %v220_v26, %v115_v28 }
  0x11   :  { %206 = vmatmul.msk.bf16.vlgmr.msra.gmra.mxu0 %vm69_vm1, %v36_v7  ;;  %v117_v30 = vadd.f32 %v220_v26, %v116_v29 }
  0x13   :  { %v119_v31 = vsel %vm118_vm2, %v220_v26, %v117_v30 }
  0x8e   :  { %v82_v9 = vpop.f32.mrf.mxu0 }
  0x8f   :  { %v87_v10 = vadd.f32 %v82_v9, %v32_v8 }
  0x91   :  { %90 = vst.msk [vmem:[#allocation2] sm:$0xff] %vm29_vm0, %v87_v10 }
  0x96   :  { %v84_v13 = vpop.f32.mrf.mxu0 }
  0x97   :  { %v88_v14 = vadd.f32 %v84_v13, %v33_v11 }
  0x98   :  { %v95_v15 = vld [vmem:[#allocation2] sm:$0xff] }
  0x99   :  { %91 = vst.msk [vmem:[#allocation2 + $0x8] sm:$0xff] %vm29_vm0, %v88_v14  ;;  %v101_v17 = vadd.f32 %v216_v12, %v95_v15 }
  0x9b   :  { %v105_v18 = vadd.f32 %v103_v16, %v101_v17 }
  0x9d   :  { %v107_v19 = vsel %vm29_vm0, %v105_v18, 0.0 }
  0x9e   :  { %108 = vadd.xlane.f32.xlu0 %v107_v19 }
  0xa0   :  { %v96_v20 = vld [vmem:[#allocation2 + $0x8] sm:$0xff] }
  0xa1   :  { %v102_v22 = vadd.f32 %v216_v12, %v96_v20 }
  0xa3   :  { %v106_v23 = vadd.f32 %v104_v21, %v102_v22 }
  0xa5   :  { %v110_v24 = vsel %vm29_vm0, %v106_v23, 0.0 }
  0xa6   :  { %111 = vadd.xlane.f32.xlu0 %v110_v24 }
 0x111   :  { %v109_v32 = vpop.xlane.xlu0 %108 }
 0x112   :  { %v120_v33 = vmul.f32 %v119_v31, %v109_v32 }
 0x114   :  { %v122_v34 = vsub.f32 %v105_v18, %v120_v33 }
 0x116   :  { %v124_v35 = vmul.f32 %v122_v34, %v122_v34 }
 0x118   :  { %v126_v36 = vsel %vm29_vm0, %v124_v35, 0.0 }
 0x119   :  { %127 = vadd.xlane.f32.xlu1 %v126_v36  ;;  %v112_v37 = vpop.xlane.xlu0 %111 }
 0x11a   :  { %v121_v38 = vmul.f32 %v119_v31, %v112_v37 }
 0x11c   :  { %v123_v39 = vsub.f32 %v106_v23, %v121_v38 }
 0x11e   :  { %v125_v40 = vmul.f32 %v123_v39, %v123_v39 }
 0x120   :  { %v129_v41 = vsel %vm29_vm0, %v125_v40, 0.0 }
 0x121   :  { %130 = vadd.xlane.f32.xlu1 %v129_v41 }
 0x18c   :  { %v128_v42 = vpop.xlane.xlu1 %127 }
 0x18d   :  { %v132_v43 = vmul.f32 %v128_v42, %v119_v31 }
 0x18f   :  { %v134_v44 = vadd.f32 1e-12, %v132_v43 }
 0x191   :  { %221 = vrsqrt.f32 %v134_v44  ;;  %vm142_vm4 = vweird.f32 %v134_v44 }
 0x194   :  { %v131_v45 = vpop.xlane.xlu1 %130 }
 0x195   :  { %v133_v46 = vmul.f32 %v131_v45, %v119_v31 }
 0x197   :  { %v222_v47 = vpop.eup %221  ;;  %v135_v48 = vadd.f32 1e-12, %v133_v46 }
 0x198   :  { %v137_v49 = vmul.f32 %v222_v47, %v134_v44  ;;  %vm143_vm3 = vweird.f32 %v222_v47 }
 0x199   :  { %223 = vrsqrt.f32 %v135_v48  ;;  %vm144_vm5 = vmor %vm142_vm4, %vm143_vm3  ;;  %vm152_vm7 = vweird.f32 %v135_v48 }
 0x19a   :  { %v138_v50 = vmul.f32 %v222_v47, %v137_v49 }
 0x19c   :  { %v139_v51 = vmul.f32 0.5, %v138_v50 }
 0x19e   :  { %v140_v52 = vsub.f32 1.5, %v139_v51 }
 0x19f   :  { %v224_v53 = vpop.eup %223 }
 0x1a0   :  { %v141_v54 = vmul.f32 %v222_v47, %v140_v52  ;;  %v147_v55 = vmul.f32 %v224_v53, %v135_v48  ;;  %vm153_vm6 = vweird.f32 %v224_v53 }
 0x1a1   :  { %vm154_vm8 = vmor %vm152_vm7, %vm153_vm6 }
 0x1a2   :  { %v145_v57 = vsel %vm144_vm5, %v222_v47, %v141_v54  ;;  %v148_v58 = vmul.f32 %v224_v53, %v147_v55 }
 0x1a3   :  { %v156_v59 = vmul.f32 %v145_v57, %v122_v34 }
 0x1a4   :  { %v149_v61 = vmul.f32 0.5, %v148_v58 }
 0x1a5   :  { %v162_v62 = vmul.f32 %v217_v56, %v156_v59 }
 0x1a6   :  { %v150_v63 = vsub.f32 1.5, %v149_v61 }
 0x1a7   :  { %v168_v0 = vadd.f32 %v218_v60, %v162_v62 }
 0x1a8   :  { %v151_v1 = vmul.f32 %v224_v53, %v150_v63 }
 0x1a9   :  { %170 = vst.msk [vmem:[#allocation3] sm:$0xff] %vm29_vm0, %v168_v0 }
 0x1aa   :  { %v155_v2 = vsel %vm154_vm8, %v224_v53, %v151_v1 }
 0x1ab   :  { %v157_v3 = vmul.f32 %v155_v2, %v123_v39 }
 0x1ad   :  { %v163_v4 = vmul.f32 %v217_v56, %v157_v3 }
 0x1af   :  { %v169_v5 = vadd.f32 %v218_v60, %v163_v4 }
 0x1b1   :  { %171 = vst.msk [vmem:[#allocation3 + $0x8] sm:$0xff] %vm29_vm0, %v169_v5 }
 0x1b2   :  { %184 = dma.vmem_to_hbm [thread:$0]  %s177_s15, 256, %s179_s18, [#allocation4], %s254_s5, %s254_s5, %s255_s19  }
 0x1b3   :  { %249 = dma.done.wait [#allocation4], 256  }
 0x1b4   :  { %250 = vsyncadd [#allocation4], 4294967040 }
 0x1b5   :  { %189 = vsyncpa [#allocation4], 1 }

</bundles_post_ra>
